<compile_context>
chip_gen: v5e
topology: v5e:2x2
jax: 0.10.0
libtpu: 0.0.40
codegen_flags: <defaults>
</compile_context>

<pallas_src>
import jax
import jax.numpy as jnp
from jax.experimental import pallas as pl
from jax.experimental.pallas import tpu as pltpu

_EPSILON = 1e-10
_LANES = 128


def _natlog_kernel(x_ref, o_ref):
    # Compute in f32 (no-op cast for f32 inputs; safe on v5e where VPU/EUP lack bf16).
    x = x_ref[...].astype(jnp.float32)
    pos = x > 0.0
    safe = jnp.where(pos, x, 1.0)                       # keep log() argument positive
    y = jnp.where(pos, jnp.log(safe + _EPSILON), 0.0)   # x <= 0 -> exactly 0
    o_ref[...] = y.astype(o_ref.dtype)


def _natlog_single_block(x2d: jax.Array, dtype, donate: bool) -> jax.Array:
    kwargs = {"input_output_aliases": {0: 0}} if donate else {}
    return pl.pallas_call(
        _natlog_kernel,
        out_shape=jax.ShapeDtypeStruct(x2d.shape, dtype),
        in_specs=[pl.BlockSpec(memory_space=pltpu.MemorySpace.VMEM)],
        out_specs=pl.BlockSpec(memory_space=pltpu.MemorySpace.VMEM),
        **kwargs,
    )(x2d)


def _natlog_tiled(x2d: jax.Array, dtype, row_tile: int, donate: bool) -> jax.Array:
    rows, lanes = x2d.shape
    grid = (pl.cdiv(rows, row_tile),)  # ragged last block: reads padded, writes masked
    kwargs = {"input_output_aliases": {0: 0}} if donate else {}
    return pl.pallas_call(
        _natlog_kernel,
        out_shape=jax.ShapeDtypeStruct((rows, lanes), dtype),
        grid_spec=pltpu.PrefetchScalarGridSpec(
            num_scalar_prefetch=0,
            grid=grid,
            in_specs=[pl.BlockSpec((row_tile, lanes), lambda i: (i, 0))],
            out_specs=pl.BlockSpec((row_tile, lanes), lambda i: (i, 0)),
        ),
        compiler_params=pltpu.CompilerParams(
            dimension_semantics=("parallel",),      # megacore / 2-TC sharding on v7x
            vmem_limit_bytes=48 * 1024 * 1024,      # headroom on v5e/v6e/v7x alike
        ),
        **kwargs,
    )(x2d)


def nat_logarithm(
    x: jax.Array,
    *,
    max_block_bytes: int = 4 * 1024 * 1024,   # per-block cap; 4 bufs -> 16 MiB << vmem limit
    small_bytes: int = 512 * 1024,            # below this: single whole-array block
    min_grid_steps: int = 8,                  # keep the pipeline (and both v7x TCs) busy
    donate: bool = False,                     # optional in-place buffer reuse
) -> jax.Array:
    """Elementwise NatLogarithm via Pallas TPU kernels. Any shape / float dtype."""
    if x.ndim == 0:
        return nat_logarithm(x.reshape(1, 1), donate=donate).reshape(())

    orig_shape = x.shape
    dtype = x.dtype
    n = x.size
    if n == 0:
        return x

    itemsize = jnp.dtype(dtype).itemsize
    total_bytes = n * itemsize
    flat = x.reshape(-1)  # contiguous reshape: free

    # ---- Small-input fast path: one lane-dense block, no grid loop. ----
    if total_bytes <= small_bytes:
        if n % _LANES == 0:
            x2d = flat.reshape(n // _LANES, _LANES)
        else:
            x2d = flat.reshape(1, n)  # full-dim block: (8,128) divisibility rule waived
        return _natlog_single_block(x2d, dtype, donate).reshape(orig_shape)

    # ---- Large-input path: lane-dense (rows, 128) slab, tiled over rows. ----
    n_bulk = (n // _LANES) * _LANES
    rows = n_bulk // _LANES

    def _round_up(a: int, b: int) -> int:
        return -(-a // b) * b

    sublane = max(8, 32 // itemsize)  # 8 for f32, 16 for bf16/f16, 32 for 8-bit
    cap_rows = max(sublane, (max_block_bytes // (_LANES * itemsize)) // sublane * sublane)
    want_rows = max(sublane, _round_up(-(-rows // min_grid_steps), sublane))
    row_tile = min(cap_rows, want_rows, _round_up(rows, sublane))

    bulk2d = (flat if n_bulk == n else flat[:n_bulk]).reshape(rows, _LANES)
    out_bulk = _natlog_tiled(bulk2d, dtype, row_tile, donate)

    if n_bulk == n:
        return out_bulk.reshape(orig_shape)

    # Ragged lane tail (< 128 elements): negligible, compute with plain jnp.
    tail = flat[n_bulk:].astype(jnp.float32)
    pos = tail > 0.0
    tail_out = jnp.where(pos, jnp.log(jnp.where(pos, tail, 1.0) + _EPSILON), 0.0).astype(dtype)
    return jnp.concatenate([out_bulk.reshape(-1), tail_out]).reshape(orig_shape)


def _reference(x):
    xf = x.astype(jnp.float32)
    pos = xf > 0.0
    return jnp.where(pos, jnp.log(jnp.where(pos, xf, 1.0) + _EPSILON), 0.0).astype(x.dtype)


if __name__ == "__main__":
    # Small NCHW activation-sized input (single lane-dense block path).
    x = jax.random.normal(jax.random.PRNGKey(0), (2, 4, 16, 16), dtype=jnp.float32)
    y = nat_logarithm(x)
    jax.block_until_ready(y)
    assert y.shape == x.shape and y.dtype == x.dtype
    assert jnp.allclose(y, _reference(x), atol=1e-5, rtol=1e-5)

    # Mid-size input (tiled path; >= 8 pipelined grid steps, no padding).
    x_big = jax.random.normal(jax.random.PRNGKey(1), (1024, 1024), dtype=jnp.float32)
    y_big = nat_logarithm(x_big)
    jax.block_until_ready(y_big)
    assert jnp.allclose(y_big, _reference(x_big), atol=1e-5, rtol=1e-5)

    # Ragged size (n % 128 != 0 and rows % tile != 0): bulk kernel + tiny jnp tail.
    x_rag = jax.random.normal(jax.random.PRNGKey(2), (1000, 173), dtype=jnp.float32)
    y_rag = nat_logarithm(x_rag)
    jax.block_until_ready(y_rag)
    assert jnp.allclose(y_rag, _reference(x_rag), atol=1e-5, rtol=1e-5)

    print("KERNEL_OK")
</pallas_src>

<mosaic_0001>
module attributes {stable_mosaic.version = 11 : i64} {
  func.func @_natlog_kernel(%arg0: memref<16x128xf32, #tpu.memory_space<vmem>>, %arg1: memref<16x128xf32, #tpu.memory_space<vmem>>) attributes {dimension_semantics = [], scalar_prefetch = 0 : i64, scratch_operands = 0 : i64, tpu.core_type = #tpu.core_type<tc>} {
    %c0 = arith.constant 0 : index
    %c0_0 = arith.constant 0 : index
    %0 = vector.load %arg0[%c0, %c0_0] : memref<16x128xf32, #tpu.memory_space<vmem>>, vector<16x128xf32>
    %cst = arith.constant 0.000000e+00 : f32
    %1 = vector.broadcast %cst : f32 to vector<16x128xf32>
    %2 = arith.cmpf ogt, %0, %1 : vector<16x128xf32>
    %cst_1 = arith.constant 1.000000e+00 : f32
    %3 = vector.broadcast %cst_1 : f32 to vector<16x128xf32>
    %4 = arith.select %2, %0, %3 : vector<16x128xi1>, vector<16x128xf32>
    %cst_2 = arith.constant 1.000000e-10 : f32
    %5 = vector.broadcast %cst_2 : f32 to vector<16x128xf32>
    %6 = arith.addf %4, %5 : vector<16x128xf32>
    %7 = math.log %6 : vector<16x128xf32>
    %cst_3 = arith.constant 0.000000e+00 : f32
    %8 = vector.broadcast %cst_3 : f32 to vector<16x128xf32>
    %9 = arith.select %2, %7, %8 : vector<16x128xi1>, vector<16x128xf32>
    %c0_4 = arith.constant 0 : index
    %c0_5 = arith.constant 0 : index
    %10 = vector.load %arg1[%c0_4, %c0_5] : memref<16x128xf32, #tpu.memory_space<vmem>>, vector<16x128xf32>
    tpu.vector_store %arg1[%c0_4, %c0_5], %9 {strides = array<i32>} : memref<16x128xf32, #tpu.memory_space<vmem>>, vector<16x128xf32>,
    return
  }
}

</mosaic_0001>

<bundles_post_ra>
// kernel: tpu_custom_call.1
= control target key start
LH: loop header
LB: loop body
LE: loop exit
PB: predicated region body
PF: predicated region fallthrough
CT: control target
= control target key end

     0   :  { %6 = vsyncpa [#allocation3], 0  ;;  %s148_s0 = inlined_call_operand.hbm [shape: f32[16,128], index: 0, kind: input, shape index: {}]   ;;  %s149_s1 = inlined_call_operand.hbm [shape: f32[16,128], index: 1, kind: output, shape index: {}]  }
   0x1   :  { %7 = vsyncpa [#allocation4], 0  ;;  %s12_s8 = sshll.u32 %s148_s0, 4  ;;  %s120_s9 = smov [#allocation2]   ;;  %s13_s8 = int_to_ptr.hbm [resolvable:$true] %s12_s8 }
   0x2   :  { %s14_s10 = sshll.u32 %s120_s9, 4  ;;  %s121_s11 = smov 128   ;;  %s15_s10 = int_to_ptr.vmem [resolvable:$true] %s14_s10 }
   0x3   :  { %s122_s12 = smov 8  }
   0x4   :  { %20 = dma.hbm_to_vmem [thread:$0]  %s13_s8, 256, %s15_s10, [#allocation3], %s121_s11, %s121_s11, %s122_s12  }
   0x5   :  { %116 = dma.done.wait [#allocation3], 256  }
   0x6   :  { %117 = vsyncadd [#allocation3], 4294967040  ;;  %v25_v0 = vld [vmem:[#allocation2] sm:$0xff]  ;;  %v26_v1 = vld [vmem:[#allocation2 + $0x8] sm:$0xff]  ;;  %s123_s0 = smov [#allocation5]   ;;  %s47_s16 = sshll.u32 %s149_s1, 4  ;;  %s48_s16 = int_to_ptr.hbm [resolvable:$true] %s47_s16 }
   0x7   :  { %vm27_vm0 = vcmp.gt.f32.partialorder %v25_v0, 0.0  ;;  %vm28_vm1 = vcmp.gt.f32.partialorder %v26_v1, 0.0  ;;  %s45_s13 = sshll.u32 %s123_s0, 4  ;;  %s46_s13 = int_to_ptr.vmem [resolvable:$true] %s45_s13 }
   0x8   :  { %v29_v2 = vsel %vm27_vm0, %v25_v0, 1.0  ;;  %v30_v3 = vsel %vm28_vm1, %v26_v1, 1.0 }
   0x9   :  { %v31_v4 = vadd.f32 1e-10, %v29_v2  ;;  %v32_v5 = vadd.f32 1e-10, %v30_v3 }
   0xb   :  { %64 = vlog2.f32 %v31_v4 }
   0xc   :  { %66 = vlog2.f32 %v32_v5 }
  0x11   :  { %v65_v6 = vpop.eup %64 }
  0x12   :  { %v67_v7 = vpop.eup %66  ;;  %v34_v8 = vmul.f32 0.6931472, %v65_v6 }
  0x13   :  { %v36_v9 = vmul.f32 0.6931472, %v67_v7 }
  0x14   :  { %v37_v10 = vsel %vm27_vm0, %v34_v8, 0.0 }
  0x15   :  { %39 = vst [vmem:[#allocation5] sm:$0xff] %v37_v10  ;;  %v38_v11 = vsel %vm28_vm1, %v36_v9, 0.0 }
  0x16   :  { %40 = vst [vmem:[#allocation5 + $0x8] sm:$0xff] %v38_v11 }
  0x17   :  { %53 = dma.vmem_to_hbm [thread:$0]  %s46_s13, 256, %s48_s16, [#allocation4], %s121_s11, %s121_s11, %s122_s12  }
  0x18   :  { %118 = dma.done.wait [#allocation4], 256  }
  0x19   :  { %119 = vsyncadd [#allocation4], 4294967040 }
  0x1a   :  { %58 = vsyncpa [#allocation3], 1 }
  0x1b   :  { %59 = vsyncpa [#allocation4], 1 }

</bundles_post_ra>
